<compile_context>
chip_gen: v5e
topology: v5e:2x2
jax: 0.10.0
libtpu: 0.0.40
codegen_flags: <defaults>
</compile_context>

<pallas_src>
import functools

import jax
import jax.numpy as jnp
from jax import lax
from jax.experimental import pallas as pl
from jax.experimental.pallas import tpu as pltpu  # noqa: F401  (kept for TPU compiler params if needed)

INPUT_SIZE = 10
HIDDEN_SIZE = 20
OUTPUT_SIZE = 2


def rnn_kernel(x_ref, w_ih_ref, w_hh_ref, b_ref, w_fc_ref, b_fc_ref, out_ref,
               *, seq_len, batch):
    """Single-invocation kernel: full RNN recurrence + final linear layer.

    x_ref:    (T*B, I)  time-major flattened input (row block t*B:(t+1)*B is step t)
    w_ih_ref: (I, H)    pre-transposed input->hidden weight
    w_hh_ref: (H, H)    pre-transposed hidden->hidden weight
    b_ref:    (1, H)    combined bias (b_ih + b_hh), hoisted out of the loop
    w_fc_ref: (H, O)    pre-transposed fc weight
    b_fc_ref: (1, O)
    out_ref:  (B, O)
    """
    H = w_hh_ref.shape[0]
    w_hh = w_hh_ref[...]  # keep resident in vregs across the unrolled loop

    # --- Hoisted input projection: ONE matmul for all T steps (off the
    #     serial dependency chain), combined bias added once. ---
    pre_all = (jnp.dot(x_ref[...], w_ih_ref[...],
                       preferred_element_type=jnp.float32)
               + b_ref[...])                                   # (T*B, H)

    # --- Serial recurrence: h lives in registers (no VMEM round-trip),
    #     loop fully unrolled (seq_len is static & small), one small matmul
    #     + tanh per step on the critical path. ---
    h = jnp.zeros((batch, H), jnp.float32)                     # h_0 = 0 (PyTorch default)
    for t in range(seq_len):
        pre_t = pre_all[t * batch:(t + 1) * batch, :]          # static slice, (B, H)
        h = jnp.tanh(pre_t + jnp.dot(h, w_hh,
                                     preferred_element_type=jnp.float32))

    # out = h_T @ W_fc^T + b_fc
    out_ref[...] = (jnp.dot(h, w_fc_ref[...],
                            preferred_element_type=jnp.float32)
                    + b_fc_ref[...])


def rnn_model_forward(x, params):
    """x: (B, T, input_size) float32 (batch_first, like the PyTorch module)."""
    B, T, I = x.shape
    H = params["w_hh"].shape[0]
    O = params["w_fc"].shape[0]

    # Glue in plain JAX: time-major flatten and weight pre-transposes.
    x_tm = jnp.transpose(x, (1, 0, 2)).reshape(T * B, I)       # (T*B, I)
    w_ih_t = params["w_ih"].T                                  # (I, H)
    w_hh_t = params["w_hh"].T                                  # (H, H)
    w_fc_t = params["w_fc"].T                                  # (H, O)
    b = (params["b_ih"] + params["b_hh"]).reshape(1, H)        # combined bias
    b_fc = params["b_fc"].reshape(1, O)

    full = lambda shape: pl.BlockSpec(shape, lambda: (0,) * len(shape))
    kernel = functools.partial(rnn_kernel, seq_len=T, batch=B)

    # NOTE: at these sizes everything fits in a handful of vregs, so a single
    # grid-less invocation with fully-resident operands is the right shape.
    # For large T, tile the time axis with a grid + pipelined BlockSpecs and
    # persist h in VMEM scratch across "arbitrary" grid steps.
    return pl.pallas_call(
        kernel,
        out_shape=jax.ShapeDtypeStruct((B, O), jnp.float32),
        grid=(),
        in_specs=[
            full((T * B, I)),
            full((I, H)),
            full((H, H)),
            full((1, H)),
            full((H, O)),
            full((1, O)),
        ],
        out_specs=full((B, O)),
    )(x_tm, w_ih_t, w_hh_t, b, w_fc_t, b_fc)


def init_params(key):
    """Deterministic init matching nn.RNN / nn.Linear shapes (U(-1/sqrt(H), 1/sqrt(H)))."""
    ks = jax.random.split(key, 6)
    bound = 1.0 / jnp.sqrt(HIDDEN_SIZE)
    u = lambda k, shape, b: jax.random.uniform(k, shape, jnp.float32, -b, b)
    return {
        "w_ih": u(ks[0], (HIDDEN_SIZE, INPUT_SIZE), bound),   # weight_ih_l0
        "w_hh": u(ks[1], (HIDDEN_SIZE, HIDDEN_SIZE), bound),  # weight_hh_l0
        "b_ih": u(ks[2], (HIDDEN_SIZE,), bound),              # bias_ih_l0
        "b_hh": u(ks[3], (HIDDEN_SIZE,), bound),              # bias_hh_l0
        "w_fc": u(ks[4], (OUTPUT_SIZE, HIDDEN_SIZE), bound),  # fc.weight
        "b_fc": u(ks[5], (OUTPUT_SIZE,), bound),              # fc.bias
    }


def reference_forward(x, params):
    """Pure-JAX reference reproducing the PyTorch semantics."""
    B = x.shape[0]
    h0 = jnp.zeros((B, HIDDEN_SIZE), jnp.float32)

    def step(h, x_t):
        h_new = jnp.tanh(x_t @ params["w_ih"].T + params["b_ih"]
                         + h @ params["w_hh"].T + params["b_hh"])
        return h_new, None

    h_last, _ = lax.scan(step, h0, jnp.transpose(x, (1, 0, 2)))
    return h_last @ params["w_fc"].T + params["b_fc"]


if __name__ == "__main__":
    key = jax.random.PRNGKey(0)
    k_param, k_x = jax.random.split(key)

    B, T = 2, 8
    x = jax.random.normal(k_x, (B, T, INPUT_SIZE), jnp.float32)
    params = init_params(k_param)

    out = rnn_model_forward(x, params)
    out = jax.block_until_ready(out)

    ref = reference_forward(x, params)
    assert out.shape == (B, OUTPUT_SIZE)
    assert jnp.allclose(out, ref, atol=1e-5, rtol=1e-5), (out, ref)

    print("KERNEL_OK")
</pallas_src>

<mosaic_0001>
module attributes {stable_mosaic.version = 11 : i64} {
  func.func @rnn_kernel(%arg0: memref<16x10xf32, #tpu.memory_space<vmem>>, %arg1: memref<10x20xf32, #tpu.memory_space<vmem>>, %arg2: memref<20x20xf32, #tpu.memory_space<vmem>>, %arg3: memref<1x20xf32, #tpu.memory_space<vmem>>, %arg4: memref<20x2xf32, #tpu.memory_space<vmem>>, %arg5: memref<1x2xf32, #tpu.memory_space<vmem>>, %arg6: memref<2x2xf32, #tpu.memory_space<vmem>>) attributes {dimension_semantics = [], scalar_prefetch = 0 : i64, scratch_operands = 0 : i64, tpu.core_type = #tpu.core_type<tc>} {
    %c0 = arith.constant 0 : index
    %c0_0 = arith.constant 0 : index
    %0 = vector.load %arg2[%c0, %c0_0] : memref<20x20xf32, #tpu.memory_space<vmem>>, vector<20x20xf32>
    %c0_1 = arith.constant 0 : index
    %c0_2 = arith.constant 0 : index
    %1 = vector.load %arg0[%c0_1, %c0_2] : memref<16x10xf32, #tpu.memory_space<vmem>>, vector<16x10xf32>
    %c0_3 = arith.constant 0 : index
    %c0_4 = arith.constant 0 : index
    %2 = vector.load %arg1[%c0_3, %c0_4] : memref<10x20xf32, #tpu.memory_space<vmem>>, vector<10x20xf32>
    %cst = arith.constant dense<0.000000e+00> : vector<16x20xf32>
    %3 = tpu.matmul %1, %2, %cst {dimension_numbers = #tpu.dot_dimension_numbers<[1], [0], [0], [1], [0, 0, 1, 1], [], []>} : vector<16x10xf32>, vector<10x20xf32>, vector<16x20xf32> -> vector<16x20xf32>
    %c0_5 = arith.constant 0 : index
    %c0_6 = arith.constant 0 : index
    %4 = vector.load %arg3[%c0_5, %c0_6] : memref<1x20xf32, #tpu.memory_space<vmem>>, vector<1x20xf32>
    %5 = vector.broadcast %4 : vector<1x20xf32> to vector<16x20xf32>
    %6 = arith.addf %3, %5 : vector<16x20xf32>
    %cst_7 = arith.constant 0.000000e+00 : f32
    %7 = vector.broadcast %cst_7 : f32 to vector<2x20xf32>
    %8 = vector.extract_strided_slice %6 {offsets = [0, 0], sizes = [2, 20], strides = [1, 1]} : vector<16x20xf32> to vector<2x20xf32>
    %cst_8 = arith.constant dense<0.000000e+00> : vector<2x20xf32>
    %9 = tpu.matmul %7, %0, %cst_8 {dimension_numbers = #tpu.dot_dimension_numbers<[1], [0], [0], [1], [0, 0, 1, 1], [], []>} : vector<2x20xf32>, vector<20x20xf32>, vector<2x20xf32> -> vector<2x20xf32>
    %10 = arith.addf %8, %9 : vector<2x20xf32>
    %11 = math.tanh %10 : vector<2x20xf32>
    %12 = vector.extract_strided_slice %6 {offsets = [2, 0], sizes = [2, 20], strides = [1, 1]} : vector<16x20xf32> to vector<2x20xf32>
    %cst_9 = arith.constant dense<0.000000e+00> : vector<2x20xf32>
    %13 = tpu.matmul %11, %0, %cst_9 {dimension_numbers = #tpu.dot_dimension_numbers<[1], [0], [0], [1], [0, 0, 1, 1], [], []>} : vector<2x20xf32>, vector<20x20xf32>, vector<2x20xf32> -> vector<2x20xf32>
    %14 = arith.addf %12, %13 : vector<2x20xf32>
    %15 = math.tanh %14 : vector<2x20xf32>
    %16 = vector.extract_strided_slice %6 {offsets = [4, 0], sizes = [2, 20], strides = [1, 1]} : vector<16x20xf32> to vector<2x20xf32>
    %cst_10 = arith.constant dense<0.000000e+00> : vector<2x20xf32>
    %17 = tpu.matmul %15, %0, %cst_10 {dimension_numbers = #tpu.dot_dimension_numbers<[1], [0], [0], [1], [0, 0, 1, 1], [], []>} : vector<2x20xf32>, vector<20x20xf32>, vector<2x20xf32> -> vector<2x20xf32>
    %18 = arith.addf %16, %17 : vector<2x20xf32>
    %19 = math.tanh %18 : vector<2x20xf32>
    %20 = vector.extract_strided_slice %6 {offsets = [6, 0], sizes = [2, 20], strides = [1, 1]} : vector<16x20xf32> to vector<2x20xf32>
    %cst_11 = arith.constant dense<0.000000e+00> : vector<2x20xf32>
    %21 = tpu.matmul %19, %0, %cst_11 {dimension_numbers = #tpu.dot_dimension_numbers<[1], [0], [0], [1], [0, 0, 1, 1], [], []>} : vector<2x20xf32>, vector<20x20xf32>, vector<2x20xf32> -> vector<2x20xf32>
    %22 = arith.addf %20, %21 : vector<2x20xf32>
    %23 = math.tanh %22 : vector<2x20xf32>
    %24 = vector.extract_strided_slice %6 {offsets = [8, 0], sizes = [2, 20], strides = [1, 1]} : vector<16x20xf32> to vector<2x20xf32>
    %cst_12 = arith.constant dense<0.000000e+00> : vector<2x20xf32>
    %25 = tpu.matmul %23, %0, %cst_12 {dimension_numbers = #tpu.dot_dimension_numbers<[1], [0], [0], [1], [0, 0, 1, 1], [], []>} : vector<2x20xf32>, vector<20x20xf32>, vector<2x20xf32> -> vector<2x20xf32>
    %26 = arith.addf %24, %25 : vector<2x20xf32>
    %27 = math.tanh %26 : vector<2x20xf32>
    %28 = vector.extract_strided_slice %6 {offsets = [10, 0], sizes = [2, 20], strides = [1, 1]} : vector<16x20xf32> to vector<2x20xf32>
    %cst_13 = arith.constant dense<0.000000e+00> : vector<2x20xf32>
    %29 = tpu.matmul %27, %0, %cst_13 {dimension_numbers = #tpu.dot_dimension_numbers<[1], [0], [0], [1], [0, 0, 1, 1], [], []>} : vector<2x20xf32>, vector<20x20xf32>, vector<2x20xf32> -> vector<2x20xf32>
    %30 = arith.addf %28, %29 : vector<2x20xf32>
    %31 = math.tanh %30 : vector<2x20xf32>
    %32 = vector.extract_strided_slice %6 {offsets = [12, 0], sizes = [2, 20], strides = [1, 1]} : vector<16x20xf32> to vector<2x20xf32>
    %cst_14 = arith.constant dense<0.000000e+00> : vector<2x20xf32>
    %33 = tpu.matmul %31, %0, %cst_14 {dimension_numbers = #tpu.dot_dimension_numbers<[1], [0], [0], [1], [0, 0, 1, 1], [], []>} : vector<2x20xf32>, vector<20x20xf32>, vector<2x20xf32> -> vector<2x20xf32>
    %34 = arith.addf %32, %33 : vector<2x20xf32>
    %35 = math.tanh %34 : vector<2x20xf32>
    %36 = vector.extract_strided_slice %6 {offsets = [14, 0], sizes = [2, 20], strides = [1, 1]} : vector<16x20xf32> to vector<2x20xf32>
    %cst_15 = arith.constant dense<0.000000e+00> : vector<2x20xf32>
    %37 = tpu.matmul %35, %0, %cst_15 {dimension_numbers = #tpu.dot_dimension_numbers<[1], [0], [0], [1], [0, 0, 1, 1], [], []>} : vector<2x20xf32>, vector<20x20xf32>, vector<2x20xf32> -> vector<2x20xf32>
    %38 = arith.addf %36, %37 : vector<2x20xf32>
    %39 = math.tanh %38 : vector<2x20xf32>
    %c0_16 = arith.constant 0 : index
    %c0_17 = arith.constant 0 : index
    %40 = vector.load %arg4[%c0_16, %c0_17] : memref<20x2xf32, #tpu.memory_space<vmem>>, vector<20x2xf32>
    %cst_18 = arith.constant dense<0.000000e+00> : vector<2x2xf32>
    %41 = tpu.matmul %39, %40, %cst_18 {dimension_numbers = #tpu.dot_dimension_numbers<[1], [0], [0], [1], [0, 0, 1, 1], [], []>} : vector<2x20xf32>, vector<20x2xf32>, vector<2x2xf32> -> vector<2x2xf32>
    %c0_19 = arith.constant 0 : index
    %c0_20 = arith.constant 0 : index
    %42 = vector.load %arg5[%c0_19, %c0_20] : memref<1x2xf32, #tpu.memory_space<vmem>>, vector<1x2xf32>
    %43 = vector.broadcast %42 : vector<1x2xf32> to vector<2x2xf32>
    %44 = arith.addf %41, %43 : vector<2x2xf32>
    %c0_21 = arith.constant 0 : index
    %c0_22 = arith.constant 0 : index
    %45 = vector.load %arg6[%c0_21, %c0_22] : memref<2x2xf32, #tpu.memory_space<vmem>>, vector<2x2xf32>
    tpu.vector_store %arg6[%c0_21, %c0_22], %44 {strides = array<i32>} : memref<2x2xf32, #tpu.memory_space<vmem>>, vector<2x2xf32>,
    return
  }
}

</mosaic_0001>

<bundles_post_ra>
// kernel: tpu_custom_call.1
= control target key start
LH: loop header
LB: loop body
LE: loop exit
PB: predicated region body
PF: predicated region fallthrough
CT: control target
= control target key end

     0   :  { %11 = vsyncpa [#allocation3], 0  ;;  %s598_s0 = inlined_call_operand.hbm [shape: f32[16,10], index: 0, kind: input, shape index: {}]   ;;  %s599_s1 = inlined_call_operand.hbm [shape: f32[10,20], index: 1, kind: input, shape index: {}]   ;;  %s600_s2 = inlined_call_operand.vmem [shape: f32[20,20], index: 2, kind: input, shape index: {}]   ;;  %s601_s3 = inlined_call_operand.vmem [shape: f32[1,20], index: 3, kind: input, shape index: {}]   ;;  %s602_s4 = inlined_call_operand.vmem [shape: f32[20,2], index: 4, kind: input, shape index: {}]   ;;  %s603_s5 = inlined_call_operand.vmem [shape: f32[1,2], index: 5, kind: input, shape index: {}]   ;;  %s604_s6 = inlined_call_operand.hbm [shape: f32[2,2], index: 6, kind: output, shape index: {}]  }
   0x1   :  { %12 = vsyncpa [#allocation6], 0 }
   0x2   :  { %13 = vsyncpa [#allocation4], 0  ;;  %s18_s23 = sshll.u32 %s598_s0, 4  ;;  %s505_s24 = smov [#allocation2]   ;;  %s19_s23 = int_to_ptr.hbm [resolvable:$true] %s18_s23 }
   0x3   :  { %s20_s25 = sshll.u32 %s505_s24, 4  ;;  %s31_s28 = sshll.u32 %s599_s1, 4  ;;  %s21_s25 = int_to_ptr.vmem [resolvable:$true] %s20_s25  ;;  %s32_s28 = int_to_ptr.hbm [resolvable:$true] %s31_s28 }
   0x4   :  { %s506_s29 = smov 128   ;;  %s507_s30 = smov 8  }
   0x5   :  { %26 = dma.hbm_to_vmem [thread:$0]  %s19_s23, 256, %s21_s25, [#allocation3], %s506_s29, %s506_s29, %s507_s30  }
   0x6   :  { %s508_s7 = smov [#allocation5]  }
   0x7   :  { %s33_s8 = sshll.u32 %s508_s7, 4  ;;  %s34_s8 = int_to_ptr.vmem [resolvable:$true] %s33_s8 }
   0x8   :  { %39 = dma.hbm_to_vmem [thread:$0]  %s32_s28, 256, %s34_s8, [#allocation6], %s506_s29, %s506_s29, %s507_s30  }
   0x9   :  { %499 = dma.done.wait [#allocation3], 256  }
   0xa   :  { %500 = vsyncadd [#allocation3], 4294967040 }
   0xb   :  { %501 = dma.done.wait [#allocation6], 256  }
   0xc   :  { %502 = vsyncadd [#allocation6], 4294967040  ;;  %vm74_vm0 = vcmask 1041408   ;;  %vm105_vm1 = vcmask 1043456   ;;  %v62_v0 = vld [vmem:[#allocation5 + $0x8] sm:$0x3] }
   0xd   :  { %v58_v1 = vld [vmem:[%s600_s2 + $0x10] sm:$0xf]  ;;  %383 = vmatpush.msk.msra.mxu0 %vm74_vm0, %v62_v0  ;;  %v57_v3 = vld [vmem:[%s600_s2 + $0x8] sm:$0xff]  ;;  %v59_v4 = vld [vmem:[#allocation2] sm:$0xff]  ;;  %vm67_vm2 = vcmask 80896   ;;  %v509_v6 = vmov 0.0  }
   0xe   :  { %v61_v2 = vld [vmem:[#allocation5] sm:$0xff]  ;;  %386 = vmatpush.msk.msra.mxu1 %vm105_vm1, %v58_v1  ;;  %v56_v5 = vld [vmem:[%s600_s2] sm:$0xff]  ;;  %387 = vmatpush.msk.msra.mxu2 %vm105_vm1, %v58_v1  ;;  %vm101_vm3 = vcmask 162816   ;;  %v60_v23 = vld [vmem:[#allocation2 + $0x8] sm:$0xff]  ;;  %s510_s21 = smov [#allocation7]   ;;  %s372_s25 = sshll.u32 %s604_s6, 4  ;;  %s373_s25 = int_to_ptr.hbm [resolvable:$true] %s372_s25 }
   0xf   :  { %389 = vmatpush.msk.msra.mxu3 %vm105_vm1, %v58_v1  ;;  %93 = vmatpush.msra.mxu0 %v61_v2  ;;  %v409_v7 = vld [vmem:[%s601_s3] ss:$0 sm:$0xff]  ;;  %v331_v44 = vld [vmem:[%s602_s4 + $0x10] sm:$0xf]  ;;  %v330_v45 = vld [vmem:[%s602_s4 + $0x8] sm:$0xff]  ;;  %s370_s22 = sshll.u32 %s510_s21, 4  ;;  %s371_s22 = int_to_ptr.vmem [resolvable:$true] %s370_s22 }
  0x10   :  { %123 = vmatpush.msra.mxu1 %v57_v3  ;;  %384 = vmatmul.msk.f32.vlgmr.msra.gmra.mxu0 %vm67_vm2, %v59_v4  ;;  %v329_v46 = vld [vmem:[%s602_s4] sm:$0xff]  ;;  %vm363_vm4 = vcmask 9216  }
  0x11   :  { %148 = vmatpush.msra.mxu2 %v57_v3  ;;  %177 = vmatpush.msra.mxu3 %v57_v3  ;;  %v410_v52 = vld [vmem:[%s603_s5] ss:$0 sm:$0xff] }
  0x12   :  { %124 = vmatpush.msra.mxu1 %v56_v5  ;;  %397 = vmatpush.msk.msrb.mxu0 %vm105_vm1, %v58_v1 }
  0x13   :  { %125 = vmatmul.f32.vlgmr.msra.gmra.mxu1 %v509_v6  ;;  %149 = vmatpush.msra.mxu2 %v56_v5 }
  0x14   :  { %178 = vmatpush.msra.mxu3 %v56_v5  ;;  %391 = vmatpush.msk.msrb.mxu1 %vm105_vm1, %v58_v1 }
  0x15   :  { %393 = vmatpush.msk.msrb.mxu2 %vm105_vm1, %v58_v1  ;;  %289 = vmatpush.msrb.mxu0 %v57_v3 }
  0x16   :  { %395 = vmatpush.msk.msrb.mxu3 %vm105_vm1, %v58_v1  ;;  %206 = vmatpush.msrb.mxu1 %v57_v3 }
  0x17   :  { %235 = vmatpush.msrb.mxu2 %v57_v3  ;;  %290 = vmatpush.msrb.mxu0 %v56_v5 }
  0x18   :  { %260 = vmatpush.msrb.mxu3 %v57_v3  ;;  %207 = vmatpush.msrb.mxu1 %v56_v5 }
  0x19   :  { %236 = vmatpush.msrb.mxu2 %v56_v5  ;;  %385 = vmatmul.msk.f32.gmra.mxu0 %vm67_vm2, %v60_v23 }
  0x1a   :  { %261 = vmatpush.msrb.mxu3 %v56_v5  ;;  %399 = vmatpush.msk.msra.mxu1 %vm105_vm1, %v58_v1 }
  0x1c   :  { %318 = vmatpush.msra.mxu1 %v57_v3 }
  0x1e   :  { %319 = vmatpush.msra.mxu1 %v56_v5 }
  0x8d   :  { %v95_v8 = vpop.f32.mrf.mxu0 }
  0x8e   :  { %v96_v9 = vadd.f32 %v409_v7, %v95_v8 }
  0x90   :  { %v126_v10 = vpop.f32.mrf.mxu1 }
  0x91   :  { %v129_v11 = vadd.f32 %v126_v10, %v96_v9 }
  0x93   :  { %411 = vtanh.f32 %v129_v11 }
  0x96   :  { %v98_v29 = vpop.f32.mrf.mxu0 }
  0x97   :  { %v99_v30 = vadd.f32 %v409_v7, %v98_v29 }
  0x99   :  { %v412_v12 = vpop.eup %411 }
  0x9a   :  { %388 = vmatmul.msk.f32.vlgmr.msra.gmra.mxu2 %vm101_vm3, %v412_v12 }
  0x9b   :  { %401 = vmatpush.msk.msra.mxu2 %vm105_vm1, %v331_v44 }
  0x9d   :  { %357 = vmatpush.msra.mxu2 %v330_v45 }
  0x9f   :  { %358 = vmatpush.msra.mxu2 %v329_v46 }
 0x11d   :  { %v151_v13 = vpop.f32.mrf.mxu2 }
 0x11e   :  { %v155_v14 = vrot.slane %v151_v13, 6 }
 0x120   :  { %v157_v15 = vadd.f32 %v155_v14, %v96_v9 }
 0x122   :  { %413 = vtanh.f32 %v157_v15 }
 0x128   :  { %v414_v16 = vpop.eup %413 }
 0x129   :  { %v160_v17 = vrot.slane %v414_v16, 2 }
 0x12b   :  { %390 = vmatmul.msk.f32.vlgmr.msra.gmra.mxu3 %vm101_vm3, %v160_v17 }
 0x1ae   :  { %v180_v18 = vpop.f32.mrf.mxu3 }
 0x1af   :  { %v184_v19 = vrot.slane %v180_v18, 4 }
 0x1b1   :  { %v186_v20 = vadd.f32 %v184_v19, %v96_v9 }
 0x1b3   :  { %415 = vtanh.f32 %v186_v20 }
 0x1b9   :  { %v416_v21 = vpop.eup %415 }
 0x1ba   :  { %v189_v22 = vrot.slane %v416_v21, 4 }
 0x1bc   :  { %392 = vmatmul.msk.f32.vlgmr.msrb.gmra.mxu1 %vm101_vm3, %v189_v22 }
 0x239   :  { %v209_v24 = vpop.f32.mrf.mxu1 }
 0x23a   :  { %v213_v25 = vrot.slane %v209_v24, 2 }
 0x23c   :  { %v215_v26 = vadd.f32 %v213_v25, %v96_v9 }
 0x23e   :  { %417 = vtanh.f32 %v215_v26 }
 0x244   :  { %v418_v27 = vpop.eup %417 }
 0x245   :  { %v218_v28 = vrot.slane %v418_v27, 6 }
 0x247   :  { %394 = vmatmul.msk.f32.vlgmr.msrb.gmra.mxu2 %vm101_vm3, %v218_v28 }
 0x2ca   :  { %v238_v31 = vpop.f32.mrf.mxu2 }
 0x2cb   :  { %v241_v32 = vadd.f32 %v238_v31, %v99_v30 }
 0x2cd   :  { %419 = vtanh.f32 %v241_v32 }
 0x2d3   :  { %v420_v33 = vpop.eup %419 }
 0x2d4   :  { %396 = vmatmul.msk.f32.vlgmr.msrb.gmra.mxu3 %vm101_vm3, %v420_v33 }
 0x357   :  { %v263_v34 = vpop.f32.mrf.mxu3 }
 0x358   :  { %v267_v35 = vrot.slane %v263_v34, 6 }
 0x35a   :  { %v269_v36 = vadd.f32 %v267_v35, %v99_v30 }
 0x35c   :  { %421 = vtanh.f32 %v269_v36 }
 0x362   :  { %v422_v37 = vpop.eup %421 }
 0x363   :  { %v272_v38 = vrot.slane %v422_v37, 2 }
 0x365   :  { %398 = vmatmul.msk.f32.vlgmr.msrb.gmra.mxu0 %vm101_vm3, %v272_v38 }
 0x3e2   :  { %v292_v39 = vpop.f32.mrf.mxu0 }
 0x3e3   :  { %v296_v40 = vrot.slane %v292_v39, 4 }
 0x3e5   :  { %v298_v41 = vadd.f32 %v296_v40, %v99_v30 }
 0x3e7   :  { %423 = vtanh.f32 %v298_v41 }
 0x3ed   :  { %v424_v42 = vpop.eup %423 }
 0x3ee   :  { %v301_v43 = vrot.slane %v424_v42, 4 }
 0x3f0   :  { %400 = vmatmul.msk.f32.vlgmr.msra.gmra.mxu1 %vm101_vm3, %v301_v43 }
 0x46d   :  { %v321_v47 = vpop.f32.mrf.mxu1 }
 0x46e   :  { %v325_v48 = vrot.slane %v321_v47, 2 }
 0x470   :  { %v327_v49 = vadd.f32 %v325_v48, %v99_v30 }
 0x472   :  { %425 = vtanh.f32 %v327_v49 }
 0x478   :  { %v426_v50 = vpop.eup %425 }
 0x479   :  { %v337_v51 = vrot.slane %v426_v50, 6 }
 0x47b   :  { %402 = vmatmul.msk.f32.vlgmr.msra.gmra.mxu2 %vm101_vm3, %v337_v51 }
 0x4fe   :  { %v360_v53 = vpop.f32.mrf.mxu2 }
 0x4ff   :  { %v361_v54 = vadd.f32 %v410_v52, %v360_v53 }
 0x501   :  { %364 = vst.msk [vmem:[#allocation7] sm:$0x3] %vm363_vm4, %v361_v54 }
 0x502   :  { %375 = dma.vmem_to_hbm [thread:$0]  %s371_s22, 32, %s373_s25, [#allocation4]  }
 0x503   :  { %503 = dma.done.wait [#allocation4], 32  }
 0x504   :  { %504 = vsyncadd [#allocation4], 4294967264 }
 0x505   :  { %380 = vsyncpa [#allocation3], 1 }
 0x506   :  { %381 = vsyncpa [#allocation6], 1 }
 0x507   :  { %382 = vsyncpa [#allocation4], 1 }

</bundles_post_ra>
